<compile_context>
chip_gen: v7x
topology: tpu7x:2x2x1
jax: 0.10.0
libtpu: 0.0.40
codegen_flags: <defaults>
</compile_context>

<pallas_src>
import functools

import jax
import jax.numpy as jnp
from jax.experimental import pallas as pl
from jax.experimental.pallas import tpu as pltpu

SMOOTH = 1.0
_BLOCK_BUDGET_BYTES = 4 << 20  # ~4 MiB (padded) per input per pipeline buffer


def _round_up(x, m):
    return ((x + m - 1) // m) * m


def _padded_block_bytes(rows, cols, dtype):
    """VMEM footprint of a (rows, cols) block after (sublane, 128)-lane padding."""
    itemsize = jnp.dtype(dtype).itemsize
    sublane = max(8, 32 // itemsize)  # 8 for f32, 16 for bf16, 32 for int8
    return _round_up(rows, sublane) * _round_up(cols, 128) * itemsize


def _pick_th(H, W, dtypes, budget):
    """Largest legal H-tile: a multiple-of-8 divisor of H (or H itself) whose
    padded per-input block footprint fits the budget."""

    def fits(th):
        return max(_padded_block_bytes(th, W, dt) for dt in dtypes) <= budget

    # Legal tile heights under the Mosaic (8, 128) block-shape rule:
    # multiples of 8 that divide H, or the full H.
    mult8_divs = [th for th in range(8, H + 1, 8) if H % th == 0]
    fitting = [th for th in mult8_divs if fits(th)]
    if fitting:
        return max(fitting)
    if mult8_divs:
        # Nothing fits the budget (very wide rows): take the smallest legal
        # tile; the wrapper bumps vmem_limit_bytes to match the actual tile.
        return min(mult8_divs)
    # H has no multiple-of-8 divisor: fall back to the full plane.
    return H


def _make_dice_kernel(th, W, acc_rows):
    """Kernel over (th, W) input blocks with (acc_rows, W) f32 accumulators."""
    ng = th // acc_rows  # sublane fold factor (static)

    def kernel(p_ref, t_ref, o_inter_ref, o_denom_ref, acc_inter, acc_denom):
        h = pl.program_id(1)

        # Reset the per-batch accumulators on the first H-tile of each batch.
        @pl.when(h == 0)
        def _():
            acc_inter[...] = jnp.zeros_like(acc_inter)
            acc_denom[...] = jnp.zeros_like(acc_denom)

        # Fold the (th, W) block into an (acc_rows, W) partial using only
        # static, tile-aligned row-group slices (pure VALU vreg adds), so the
        # accumulator is read/written just once per block.
        p0 = p_ref[0:acc_rows, :].astype(jnp.float32)
        t0 = t_ref[0:acc_rows, :].astype(jnp.float32)
        inter = p0 * t0
        denom = p0 + t0
        for g in range(1, ng):
            pg = p_ref[g * acc_rows:(g + 1) * acc_rows, :].astype(jnp.float32)
            tg = t_ref[g * acc_rows:(g + 1) * acc_rows, :].astype(jnp.float32)
            inter = inter + pg * tg
            denom = denom + (pg + tg)
        acc_inter[...] += inter
        acc_denom[...] += denom

        # On the last H-tile of this batch, do the one cross-lane reduction and
        # emit the per-batch partial sums as lane-dense blocks.
        @pl.when(h == pl.num_programs(1) - 1)
        def _():
            o_inter_ref[...] = (
                jnp.zeros(o_inter_ref.shape, jnp.float32)
                + jnp.sum(acc_inter[...])
            )
            o_denom_ref[...] = (
                jnp.zeros(o_denom_ref.shape, jnp.float32)
                + jnp.sum(acc_denom[...])
            )

    return kernel


@functools.partial(jax.jit, static_argnames=("block_budget_bytes",))
def dice_loss(y_pred, y_true, block_budget_bytes=_BLOCK_BUDGET_BYTES):
    assert y_pred.shape == y_true.shape
    N, _, H, W = y_pred.shape
    dtypes = (y_pred.dtype, y_true.dtype)

    th = _pick_th(H, W, dtypes, block_budget_bytes)
    acc_rows = 8 if th % 8 == 0 else th
    grid = (N, H // th)

    # Channel index pinned to 0 in the index_map: only channel-0 bytes are
    # DMA'd; batch/channel dims are squeezed so the kernel sees (th, W) tiles.
    in_spec = pl.BlockSpec((None, None, th, W), lambda b, h: (b, 0, h, 0))
    # Per-batch partial outputs: small lane-dense (1, 8, 128) blocks, constant
    # along the (arbitrary) reduction axis.
    out_spec = pl.BlockSpec((1, 8, 128), lambda b, h: (b, 0, 0))

    # Explicit scoped-VMEM budget: 2 double-buffered inputs + accumulators.
    in_blk = sum(_padded_block_bytes(th, W, dt) for dt in dtypes)
    acc_bytes = 2 * _padded_block_bytes(acc_rows, W, jnp.float32)
    out_bytes = 2 * 2 * 8 * 128 * 4  # two outputs, double-buffered
    vmem_limit = int(
        min(64 << 20, max(32 << 20, 2 * in_blk + acc_bytes + out_bytes + (4 << 20)))
    )

    itembytes = sum(jnp.dtype(dt).itemsize for dt in dtypes)
    cost = pl.CostEstimate(
        flops=4 * N * H * W,
        transcendentals=0,
        bytes_accessed=N * H * W * itembytes + 2 * N * 8 * 128 * 4,
    )

    out_inter, out_denom = pl.pallas_call(
        _make_dice_kernel(th, W, acc_rows),
        out_shape=(
            jax.ShapeDtypeStruct((N, 8, 128), jnp.float32),
            jax.ShapeDtypeStruct((N, 8, 128), jnp.float32),
        ),
        grid_spec=pltpu.PrefetchScalarGridSpec(
            num_scalar_prefetch=0,
            grid=grid,
            in_specs=[in_spec, in_spec],
            out_specs=[out_spec, out_spec],
            scratch_shapes=[
                pltpu.VMEM((acc_rows, W), jnp.float32),  # intersection partial
                pltpu.VMEM((acc_rows, W), jnp.float32),  # p + t partial
            ],
        ),
        compiler_params=pltpu.CompilerParams(
            dimension_semantics=("parallel", "arbitrary"),
            vmem_limit_bytes=vmem_limit,
        ),
        cost_estimate=cost,
    )(y_pred, y_true)

    # Tiny final reduce + dice formula (negligible next to the streamed inputs).
    inter = jnp.sum(out_inter[:, 0, 0])
    denom = jnp.sum(out_denom[:, 0, 0])
    return 1.0 - (2.0 * inter + SMOOTH) / (denom + SMOOTH)


def dice_loss_ref(y_pred, y_true):
    p = y_pred[:, 0].reshape(-1).astype(jnp.float32)
    t = y_true[:, 0].reshape(-1).astype(jnp.float32)
    inter = jnp.sum(p * t)
    dsc = (2.0 * inter + SMOOTH) / (jnp.sum(p) + jnp.sum(t) + SMOOTH)
    return 1.0 - dsc


if __name__ == "__main__":
    key = jax.random.PRNGKey(0)
    k1, k2, k3, k4 = jax.random.split(key, 4)

    # Test 1: small segmentation-like output (N, C, H, W).
    y_pred = jax.random.uniform(k1, (2, 4, 16, 16), dtype=jnp.float32)
    y_true = (
        jax.random.uniform(k2, (2, 4, 16, 16), dtype=jnp.float32) > 0.5
    ).astype(jnp.float32)
    loss = jax.block_until_ready(dice_loss(y_pred, y_true))
    ref = dice_loss_ref(y_pred, y_true)
    assert jnp.allclose(loss, ref, atol=1e-5, rtol=1e-5), (loss, ref)

    # Test 2: force a tiny block budget so H is tiled, exercising the
    # grid-carried accumulator (init / accumulate / finalize) path.
    y_pred2 = jax.random.uniform(k3, (2, 3, 32, 16), dtype=jnp.float32)
    y_true2 = (
        jax.random.uniform(k4, (2, 3, 32, 16), dtype=jnp.float32) > 0.5
    ).astype(jnp.float32)
    loss2 = jax.block_until_ready(
        dice_loss(y_pred2, y_true2, block_budget_bytes=4096)
    )
    ref2 = dice_loss_ref(y_pred2, y_true2)
    assert jnp.allclose(loss2, ref2, atol=1e-5, rtol=1e-5), (loss2, ref2)

    print("KERNEL_OK")
</pallas_src>

<mosaic_0001>
module attributes {stable_mosaic.version = 11 : i64} {
  func.func @kernel(%arg0: i32, %arg1: i32, %arg2: memref<1x1x16x16xf32, #tpu.memory_space<vmem>>, %arg3: memref<1x1x16x16xf32, #tpu.memory_space<vmem>>, %arg4: memref<1x8x128xf32, #tpu.memory_space<vmem>>, %arg5: memref<1x8x128xf32, #tpu.memory_space<vmem>>, %arg6: memref<8x16xf32, #tpu.memory_space<vmem>>, %arg7: memref<8x16xf32, #tpu.memory_space<vmem>>) attributes {dimension_semantics = [#tpu.dimension_semantics<parallel>, #tpu.dimension_semantics<arbitrary>], iteration_bounds = array<i64: 2, 1>, scalar_prefetch = 0 : i64, scratch_operands = 2 : i64, tpu.core_type = #tpu.core_type<tc>, window_params = [{transform_indices = @transform_0, window_bounds = array<i64: 1, 1, 16, 16>}, {transform_indices = @transform_1, window_bounds = array<i64: 1, 1, 16, 16>}, {transform_indices = @transform_2, window_bounds = array<i64: 1, 8, 128>}, {transform_indices = @transform_3, window_bounds = array<i64: 1, 8, 128>}]} {
    %c0_i32 = arith.constant 0 : i32
    %0 = arith.cmpi eq, %arg1, %c0_i32 : i32
    %1 = arith.extui %0 : i1 to i32
    %c0_i32_0 = arith.constant 0 : i32
    %2 = arith.cmpi ne, %1, %c0_i32_0 : i32
    scf.if %2 {
      %cst = arith.constant 0.000000e+00 : f32
      %26 = vector.broadcast %cst : f32 to vector<8x16xf32>
      %c0_25 = arith.constant 0 : index
      %c0_26 = arith.constant 0 : index
      %27 = vector.load %arg6[%c0_25, %c0_26] : memref<8x16xf32, #tpu.memory_space<vmem>>, vector<8x16xf32>
      tpu.vector_store %arg6[%c0_25, %c0_26], %26 {strides = array<i32>} : memref<8x16xf32, #tpu.memory_space<vmem>>, vector<8x16xf32>,
      %cst_27 = arith.constant 0.000000e+00 : f32
      %28 = vector.broadcast %cst_27 : f32 to vector<8x16xf32>
      %c0_28 = arith.constant 0 : index
      %c0_29 = arith.constant 0 : index
      %29 = vector.load %arg7[%c0_28, %c0_29] : memref<8x16xf32, #tpu.memory_space<vmem>>, vector<8x16xf32>
      tpu.vector_store %arg7[%c0_28, %c0_29], %28 {strides = array<i32>} : memref<8x16xf32, #tpu.memory_space<vmem>>, vector<8x16xf32>,
    } else {
    }
    %c0 = arith.constant 0 : index
    %c0_1 = arith.constant 0 : index
    %c0_2 = arith.constant 0 : index
    %c0_3 = arith.constant 0 : index
    %3 = vector.load %arg2[%c0, %c0_1, %c0_2, %c0_3] : memref<1x1x16x16xf32, #tpu.memory_space<vmem>>, vector<1x1x8x16xf32>
    %4 = vector.shape_cast %3 : vector<1x1x8x16xf32> to vector<8x16xf32>
    %c0_4 = arith.constant 0 : index
    %c0_5 = arith.constant 0 : index
    %c0_6 = arith.constant 0 : index
    %c0_7 = arith.constant 0 : index
    %5 = vector.load %arg3[%c0_4, %c0_5, %c0_6, %c0_7] : memref<1x1x16x16xf32, #tpu.memory_space<vmem>>, vector<1x1x8x16xf32>
    %6 = vector.shape_cast %5 : vector<1x1x8x16xf32> to vector<8x16xf32>
    %7 = arith.mulf %4, %6 : vector<8x16xf32>
    %8 = arith.addf %4, %6 : vector<8x16xf32>
    %c0_8 = arith.constant 0 : index
    %c0_9 = arith.constant 0 : index
    %c8 = arith.constant 8 : index
    %c0_10 = arith.constant 0 : index
    %9 = vector.load %arg2[%c0_8, %c0_9, %c8, %c0_10] : memref<1x1x16x16xf32, #tpu.memory_space<vmem>>, vector<1x1x8x16xf32>
    %10 = vector.shape_cast %9 : vector<1x1x8x16xf32> to vector<8x16xf32>
    %c0_11 = arith.constant 0 : index
    %c0_12 = arith.constant 0 : index
    %c8_13 = arith.constant 8 : index
    %c0_14 = arith.constant 0 : index
    %11 = vector.load %arg3[%c0_11, %c0_12, %c8_13, %c0_14] : memref<1x1x16x16xf32, #tpu.memory_space<vmem>>, vector<1x1x8x16xf32>
    %12 = vector.shape_cast %11 : vector<1x1x8x16xf32> to vector<8x16xf32>
    %13 = arith.mulf %10, %12 : vector<8x16xf32>
    %14 = arith.addf %7, %13 : vector<8x16xf32>
    %15 = arith.addf %10, %12 : vector<8x16xf32>
    %16 = arith.addf %8, %15 : vector<8x16xf32>
    %c0_15 = arith.constant 0 : index
    %c0_16 = arith.constant 0 : index
    %17 = vector.load %arg6[%c0_15, %c0_16] : memref<8x16xf32, #tpu.memory_space<vmem>>, vector<8x16xf32>
    %18 = arith.addf %17, %14 : vector<8x16xf32>
    %c0_17 = arith.constant 0 : index
    %c0_18 = arith.constant 0 : index
    %19 = vector.load %arg6[%c0_17, %c0_18] : memref<8x16xf32, #tpu.memory_space<vmem>>, vector<8x16xf32>
    tpu.vector_store %arg6[%c0_17, %c0_18], %18 {strides = array<i32>} : memref<8x16xf32, #tpu.memory_space<vmem>>, vector<8x16xf32>,
    %c0_19 = arith.constant 0 : index
    %c0_20 = arith.constant 0 : index
    %20 = vector.load %arg7[%c0_19, %c0_20] : memref<8x16xf32, #tpu.memory_space<vmem>>, vector<8x16xf32>
    %21 = arith.addf %20, %16 : vector<8x16xf32>
    %c0_21 = arith.constant 0 : index
    %c0_22 = arith.constant 0 : index
    %22 = vector.load %arg7[%c0_21, %c0_22] : memref<8x16xf32, #tpu.memory_space<vmem>>, vector<8x16xf32>
    tpu.vector_store %arg7[%c0_21, %c0_22], %21 {strides = array<i32>} : memref<8x16xf32, #tpu.memory_space<vmem>>, vector<8x16xf32>,
    %c0_i32_23 = arith.constant 0 : i32
    %23 = arith.cmpi eq, %arg1, %c0_i32_23 : i32
    %24 = arith.extui %23 : i1 to i32
    %c0_i32_24 = arith.constant 0 : i32
    %25 = arith.cmpi ne, %24, %c0_i32_24 : i32
    scf.if %25 {
      %cst = arith.constant 0.000000e+00 : f32
      %26 = vector.broadcast %cst : f32 to vector<1x8x128xf32>
      %c0_25 = arith.constant 0 : index
      %c0_26 = arith.constant 0 : index
      %27 = vector.load %arg6[%c0_25, %c0_26] : memref<8x16xf32, #tpu.memory_space<vmem>>, vector<8x16xf32>
      %28 = vector.shape_cast %27 : vector<8x16xf32> to vector<1x8x16xf32>
      %cst_27 = arith.constant dense<0.000000e+00> : vector<1xf32>
      %29 = vector.multi_reduction <add>, %28, %cst_27 [1, 2] : vector<1x8x16xf32> to vector<1xf32>
      %30 = vector.shape_cast %29 : vector<1xf32> to vector<1x1x1xf32>
      %31 = vector.extract %30[0, 0, 0] : f32 from vector<1x1x1xf32>
      %32 = vector.broadcast %31 : f32 to vector<1x8x128xf32>
      %33 = arith.addf %26, %32 : vector<1x8x128xf32>
      %c0_28 = arith.constant 0 : index
      %c0_29 = arith.constant 0 : index
      %c0_30 = arith.constant 0 : index
      %34 = vector.load %arg4[%c0_28, %c0_29, %c0_30] : memref<1x8x128xf32, #tpu.memory_space<vmem>>, vector<1x8x128xf32>
      tpu.vector_store %arg4[%c0_28, %c0_29, %c0_30], %33 {strides = array<i32>} : memref<1x8x128xf32, #tpu.memory_space<vmem>>, vector<1x8x128xf32>,
      %cst_31 = arith.constant 0.000000e+00 : f32
      %35 = vector.broadcast %cst_31 : f32 to vector<1x8x128xf32>
      %c0_32 = arith.constant 0 : index
      %c0_33 = arith.constant 0 : index
      %36 = vector.load %arg7[%c0_32, %c0_33] : memref<8x16xf32, #tpu.memory_space<vmem>>, vector<8x16xf32>
      %37 = vector.shape_cast %36 : vector<8x16xf32> to vector<1x8x16xf32>
      %cst_34 = arith.constant dense<0.000000e+00> : vector<1xf32>
      %38 = vector.multi_reduction <add>, %37, %cst_34 [1, 2] : vector<1x8x16xf32> to vector<1xf32>
      %39 = vector.shape_cast %38 : vector<1xf32> to vector<1x1x1xf32>
      %40 = vector.extract %39[0, 0, 0] : f32 from vector<1x1x1xf32>
      %41 = vector.broadcast %40 : f32 to vector<1x8x128xf32>
      %42 = arith.addf %35, %41 : vector<1x8x128xf32>
      %c0_35 = arith.constant 0 : index
      %c0_36 = arith.constant 0 : index
      %c0_37 = arith.constant 0 : index
      %43 = vector.load %arg5[%c0_35, %c0_36, %c0_37] : memref<1x8x128xf32, #tpu.memory_space<vmem>>, vector<1x8x128xf32>
      tpu.vector_store %arg5[%c0_35, %c0_36, %c0_37], %42 {strides = array<i32>} : memref<1x8x128xf32, #tpu.memory_space<vmem>>, vector<1x8x128xf32>,
    } else {
    }
    return
  }
  func.func @transform_0(%arg0: i32, %arg1: i32) -> (i32, i32, i32, i32) {
    %c0_i32 = arith.constant 0 : i32
    %c0_i32_0 = arith.constant 0 : i32
    %c0_i32_1 = arith.constant 0 : i32
    return %arg0, %c0_i32, %arg1, %c0_i32_0 : i32, i32, i32, i32
  }
  func.func @transform_1(%arg0: i32, %arg1: i32) -> (i32, i32, i32, i32) {
    %c0_i32 = arith.constant 0 : i32
    %c0_i32_0 = arith.constant 0 : i32
    %c0_i32_1 = arith.constant 0 : i32
    return %arg0, %c0_i32, %arg1, %c0_i32_0 : i32, i32, i32, i32
  }
  func.func @transform_2(%arg0: i32, %arg1: i32) -> (i32, i32, i32) {
    %c0_i32 = arith.constant 0 : i32
    %c0_i32_0 = arith.constant 0 : i32
    %c0_i32_1 = arith.constant 0 : i32
    return %arg0, %c0_i32, %c0_i32_0 : i32, i32, i32
  }
  func.func @transform_3(%arg0: i32, %arg1: i32) -> (i32, i32, i32) {
    %c0_i32 = arith.constant 0 : i32
    %c0_i32_0 = arith.constant 0 : i32
    %c0_i32_1 = arith.constant 0 : i32
    return %arg0, %c0_i32, %c0_i32_0 : i32, i32, i32
  }
}

</mosaic_0001>

<bundles_post_ra>
// kernel: dice_loss.1
= control target key start
LH: loop header
LB: loop body
LE: loop exit
PB: predicated region body
PF: predicated region fallthrough
CT: control target
= control target key end

     0   :  { %9 = vsyncpa [#allocation5], 0  ;;  %s870_s0 = inlined_call_operand.hbm [shape: f32[2,4,16,16], index: 0, kind: input, shape index: {}]   ;;  %s871_s1 = inlined_call_operand.hbm [shape: f32[2,4,16,16], index: 1, kind: input, shape index: {}]   ;;  %s872_s2 = inlined_call_operand.vmem [shape: f32[2,8,128], index: 2, kind: output, shape index: {0}]   ;;  %s873_s3 = inlined_call_operand.vmem [shape: f32[2,8,128], index: 3, kind: output, shape index: {1}]  }
   0x1   :  { %11 = vsyncpa [#allocation5 + $0x1], 0 }
   0x2   :  { %12 = vsyncpa [#allocation7], 0 }
   0x3   :  { %14 = vsyncpa [#allocation7 + $0x1], 0  ;;  %s677_s12 = smov 0   ;;  %s679_s13 = smov 0  }
   0x4   :  { %s681_s14 = smov 0   ;;  %s683_s15 = smov 0  }
   0x5   :  { %s685_s16 = smov 0   ;;  %s687_s17 = smov 0  }
   0x6 LB: > { %s450_s18 = sadd.s32 4294967295, %s650_s17   ;;  %s32_s19 = sadd.s32 1, %s646_s16  ;;  %s650_s17 = sphi %s687_s17, %s20_s17   ;;  %s646_s16 = sphi %s685_s16, %s884_s16   ;;  %s642_s15 = sphi %s683_s15, %s883_s15   ;;  %s638_s14 = sphi %s681_s14, %s882_s14   ;;  %s634_s13 = sphi %s679_s13, %s881_s13   ;;  %s630_s12 = sphi %s677_s12, %s880_s12  }
   0x7   : > { %p34_p0 = scmp.ge.s32.totalorder %s32_s19, 2  ;;  %s41_s20 = sadd.s32 1, %s638_s14 }
   0x8   : > { %p48_p1 = scmp.ne.s32.totalorder %s638_s14, %s634_s13  ;;  %p49_p2 = scmp.eq.s32.totalorder %s650_s17, 0 }
   0x9   : > { %s886_s19 = smov (%p34_p0, %s32_s19), 0  ;;  %p54_p4 = scmp.ne.s32.totalorder %s634_s13, %s630_s12 }
   0xa   : > { %p713_p3 = por %p49_p2, %p48_p1  ;;  %s36_s22 = ssub.s32 %s646_s16, %s886_s19 }
   0xb   : > { %p55_p5 = scmp.eq.s32.totalorder %s450_s18, 0  ;;  %p39_p6 = scmp.eq.s32.totalorder %s36_s22, 0 }
   0xc   : > { %p484_p8 = scmp.lt.s32.totalorder %s650_s17, 2  ;;  %s729_s25 = sand.u32 1, %s638_s14  }
   0xd   : > { %p720_p7 = por %p55_p5, %p54_p4  ;;  %s467_s26 = sshll.u32 %s646_s16, 10 }
   0xe   : > { %s726_s24 = scalar_select %p39_p6, %s638_s14, %s41_s20  }
   0xf   : > { %s876_s23 = scalar_select %p720_p7, 1, 0 }
  0x10   : > { %s454_s27 = sshll.u32 %s729_s25, 4  ;;  %s738_s30 = scalar_lea.hbm %s870_s0, %s467_s26 }
  0x11   : > { %s162_s4 = scalar_lea.vmem [#allocation4], %s454_s27  ;;  %p744_p9 = pnand %p484_p8, %p713_p3 }
  0x12   : > { %s171_s5 = sshll.u32 %s162_s4, 4  ;;  %s159_s7 = scalar_lea.sflag [#allocation5], %s729_s25  ;;  %s748_s5 = int_to_ptr.vmem [resolvable:$true] %s171_s5 }
  0x13   : > { %s536_s8 = scalar_lea.hbm %s738_s30, 256  ;;  %p538_p11 = pneg %p744_p9 }
  0x14   : > { %p537_p10 = scmp.ne.s32.totalorder %s738_s30, %s536_s8  ;;  %s541_s11 = scalar_lea.hbm %s870_s0, 2048 }
  0x15   : > { %p542_p0 = scmp.lt.u32.totalorder %s738_s30, %s870_s0  ;;  %p543_p1 = scmp.lt.u32.totalorder %s541_s11, %s536_s8 }
  0x16   : > { %p539_p12 = pnand %p538_p11, %p537_p10  ;;  %p545_p3 = scmp.lt.u32.totalorder %s536_s8, %s738_s30 }
  0x17   : > { %p544_p2 = por %p543_p1, %p542_p0 }
  0x18   : > { %p540_p13 = pneg %p539_p12 }
  0x19   : > { %p546_p4 = por %p545_p3, %p544_p2 }
  0x1b   : > { %p547_p5 = pnand %p546_p4, %p540_p13 }
  0x1d   : > { %550 = shalt.err (!%p547_p5)
}
  0x1e   : > { %s551_s20 = scalar_lea.vmem %s748_s5, 256  ;;  %s652_s21 = smov [#allocation4]  }
  0x1f   : > { %p552_p6 = scmp.ne.s32.totalorder %s748_s5, %s551_s20  ;;  %s556_s22 = sshll.u32 %s652_s21, 4  ;;  %s557_s22 = int_to_ptr.vmem [resolvable:$false] %s556_s22 }
  0x20   : > { %s558_s28 = scalar_lea.vmem %s557_s22, 512  ;;  %p559_p12 = scmp.lt.s32.totalorder %s748_s5, %s557_s22 }
  0x21   : > { %p554_p8 = pnand %p552_p6, %p538_p11  ;;  %p560_p0 = scmp.lt.s32.totalorder %s558_s28, %s551_s20 }
  0x23   : > { %p555_p10 = pneg %p554_p8  ;;  %p561_p1 = por %p560_p0, %p559_p12 }
  0x25   : > { %p562_p2 = pnand %p561_p1, %p555_p10 }
  0x27   : > { %565 = shalt.err (!%p562_p2)
}
  0x28   : > { %s653_s29 = smov 128   ;;  %s654_s4 = smov 8  }
  0x29   : > { %480 = dma.hbm_to_vmem [thread:$0]  (!%p744_p9), %s738_s30, 256, %s748_s5, %s159_s7, %s653_s29, %s653_s29, %s654_s4  }
  0x2a   : > { %p460_p13 = scmp.ge.s32.totalorder %s650_s17, 1  ;;  %p202_p3 = scmp.lt.s32.totalorder %s650_s17, 3 }
  0x2b   : > { %s792_s11 = scalar_lea.hbm %s871_s1, %s467_s26  ;;  %s185_s12 = scalar_lea.vmem [#allocation6], %s454_s27 }
  0x2c   : > { %p783_p4 = pnand %p460_p13, %p202_p3  ;;  %s194_s18 = sshll.u32 %s185_s12, 4  ;;  %s796_s18 = int_to_ptr.vmem [resolvable:$true] %s194_s18 }
  0x2d   : > { %s182_s30 = scalar_lea.sflag [#allocation7], %s729_s25  ;;  %s566_s5 = scalar_lea.hbm %s792_s11, 256 }
  0x2e   : > { %p567_p5 = scmp.ne.s32.totalorder %s792_s11, %s566_s5  ;;  %s571_s26 = scalar_lea.hbm %s871_s1, 2048 }
  0x2f   : > { %p572_p10 = scmp.lt.u32.totalorder %s792_s11, %s871_s1  ;;  %p573_p12 = scmp.lt.u32.totalorder %s571_s26, %s566_s5 }
  0x30   : > { %p569_p6 = pnand %p567_p5, %p538_p11  ;;  %p575_p1 = scmp.lt.u32.totalorder %s566_s5, %s792_s11 }
  0x31   : > { %p574_p0 = por %p573_p12, %p572_p10 }
  0x32   : > { %p570_p8 = pneg %p569_p6 }
  0x33   : > { %p576_p2 = por %p575_p1, %p574_p0 }
  0x35   : > { %p577_p13 = pnand %p576_p2, %p570_p8 }
  0x37   : > { %580 = shalt.err (!%p577_p13)
}
  0x38   : > { %s581_s27 = scalar_lea.vmem %s796_s18, 256  ;;  %s655_s28 = smov [#allocation6]  }
  0x39   : > { %p582_p3 = scmp.ne.s32.totalorder %s796_s18, %s581_s27  ;;  %s586_s9 = sshll.u32 %s655_s28, 4  ;;  %s587_s9 = int_to_ptr.vmem [resolvable:$false] %s586_s9 }
  0x3a   : > { %s588_s10 = scalar_lea.vmem %s587_s9, 512  ;;  %p589_p7 = scmp.lt.s32.totalorder %s796_s18, %s587_s9 }
  0x3b   : > { %p584_p5 = pnand %p582_p3, %p538_p11  ;;  %p590_p10 = scmp.lt.s32.totalorder %s588_s10, %s581_s27 }
  0x3d   : > { %p585_p6 = pneg %p584_p5  ;;  %p591_p12 = por %p590_p10, %p589_p7 }
  0x3f   : > { %p592_p0 = pnand %p591_p12, %p585_p6 }
  0x41   : > { %595 = shalt.err (!%p592_p0)
}
  0x42   : > { %483 = dma.hbm_to_vmem [thread:$0]  (!%p744_p9), %s792_s11, 256, %s796_s18, %s182_s30, %s653_s29, %s653_s29, %s654_s4  }
  0x43   : > { %206 = sbr.rel (%p783_p4) target bundleno = 307 (0x133), region = 28  ;;  %s208_s12 = sand.u32 (!%p783_p4), 1, %s634_s13  }
  0x44   : > { %s461_s5 = sshll.u32 (!%p783_p4), %s208_s12, 4  ;;  %s209_s7 = scalar_lea.sflag (!%p783_p4), [#allocation5], %s208_s12 }
  0x45   : > { %s212_s20 = scalar_lea.vmem (!%p783_p4), [#allocation4], %s461_s5  ;;  %p879_p7 = scmp.ne.s32.totalorder (!%p783_p4), %s876_s23, 0 }
  0x4a   : > { %621 = dma.done.wait (%p879_p7), %s209_s7, 256  }
  0x4b   : > { %623 = vsyncadd (%p879_p7), %s209_s7, 4294967040  ;;  %s218_s6 = scalar_lea.sflag [#allocation7], %s208_s12  ;;  %s221_s25 = scalar_lea.vmem [#allocation6], %s461_s5 }
  0x4c   : > { %625 = dma.done.wait (%p879_p7), %s218_s6, 256  }
  0x4d   : > { %627 = vsyncadd (%p879_p7), %s218_s6, 4294967040  ;;  %vm266_vm0 = vcmask 130048   ;;  %v656_v0 = vmov 0.0   ;;  %v269_v1 = vld [vmem:[%s212_s20] sm:$0xff]  ;;  %v273_v3 = vld [vmem:[%s212_s20 + $0x8] sm:$0xff]  ;;  %p254_p9 = scmp.lt.s32.totalorder %s642_s15, 1 }
  0x4e   : > { %267 = vst.msk [vmem:[#allocation2] sm:$0xff] %vm266_vm0, %v656_v0  ;;  %268 = vst.msk [vmem:[#allocation3] sm:$0xff] %vm266_vm0, %v656_v0  ;;  %v270_v2 = vld [vmem:[%s221_s25] sm:$0xff]  ;;  %v274_v6 = vld [vmem:[%s221_s25 + $0x8] sm:$0xff] }
  0x4f   : > { %v271_v4 = vmul.f32 %v270_v2, %v269_v1  ;;  %v272_v5 = vadd.f32 %v270_v2, %v269_v1  ;;  %v275_v7 = vmul.f32 %v274_v6, %v273_v3  ;;  %v277_v8 = vadd.f32 %v274_v6, %v273_v3  ;;  %s888_s15 = smov (!%p254_p9, %s642_s15), 1 }
  0x50   : > { %s463_s23 = sshll.u32 %s888_s15, 3 }
  0x51   : > { %v276_v11 = vadd.f32 %v275_v7, %v271_v4  ;;  %v278_v12 = vadd.f32 %v277_v8, %v272_v5  ;;  %s257_s8 = scalar_lea.vmem %s872_s2, %s463_s23  ;;  %s261_s26 = scalar_lea.vmem %s873_s3, %s463_s23 }
  0x55   : > { %v279_v9 = vld [vmem:[#allocation2] sm:$0xff]  ;;  %v283_v10 = vld [vmem:[#allocation3] sm:$0xff] }
  0x56   : > { %v280_v13 = vadd.f32 %v279_v9, %v276_v11  ;;  %v284_v14 = vadd.f32 %v283_v10, %v278_v12 }
  0x58   : > { %282 = vst.msk [vmem:[#allocation2] sm:$0xff] %vm266_vm0, %v280_v13  ;;  %285 = vst.msk [vmem:[#allocation3] sm:$0xff] %vm266_vm0, %v284_v14 }
  0x5f   : > { %v289_v15 = vld [vmem:[#allocation2] sm:$0xff]  ;;  %v303_v16 = vld [vmem:[#allocation3] sm:$0xff] }
  0x60   : > { %v290_v17 = vsel %vm266_vm0, %v289_v15, 0.0  ;;  %v304_v18 = vsel %vm266_vm0, %v303_v16, 0.0 }
  0x61   : > { %291 = vadd.xlane.f32.xlu0 %v290_v17 }
  0x65   : > { %305 = vadd.xlane.f32.xlu0 %v304_v18 }
  0xee   : > { %v292_v19 = vpop.xlane.xlu0 %291 }
  0xef   : > { %v293_v20 = vrot.slane %v292_v19, 4 }
  0xf1   : > { %v294_v21 = vadd.f32 %v293_v20, %v292_v19 }
  0xf2   : > { %v306_v22 = vpop.xlane.xlu0 %305 }
  0xf3   : > { %v295_v23 = vrot.slane %v294_v21, 2  ;;  %v307_v24 = vrot.slane %v306_v22, 4 }
  0xf5   : > { %v308_v25 = vadd.f32 %v307_v24, %v306_v22  ;;  %v296_v26 = vadd.f32 %v295_v23, %v294_v21 }
  0xf7   : > { %v309_v27 = vrot.slane %v308_v25, 2  ;;  %v297_v28 = vrot.slane %v296_v26, 1 }
  0xf9   : > { %v310_v29 = vadd.f32 %v309_v27, %v308_v25  ;;  %v298_v30 = vadd.f32 %v297_v28, %v296_v26 }
  0xfb   : > { %469 = vpush %v298_v30  ;;  %v311_v31 = vrot.slane %v310_v29, 1 }
  0xfd   : > { %v312_v32 = vadd.f32 %v311_v31, %v310_v29 }
  0xff   : > { %471 = vpush %v312_v32 }
 0x12c   : > { %s470_s11 = spop %469 }
 0x12d   : > { %v300_v33 = vstv %s470_s11 }
 0x12e   : > { %302 = vst [vmem:[%s257_s8] sm:$0xff] %v300_v33 }
 0x130   : > { %s472_s21 = spop %471 }
 0x131   : > { %v314_v34 = vstv %s472_s21 }
 0x132   : > { %316 = vst [vmem:[%s261_s26] sm:$0xff] %v314_v34 }
 0x133 PF: > { %s20_s17 = sadd.s32 1, %s650_s17   ;;  %s880_s12 = smov %s634_s13 }
 0x134   : > { %p17_p11 = scmp.ge.s32.totalorder %s20_s17, 4   ;;  %s881_s13 = smov %s638_s14 }
 0x135   : > { %s882_s14 = smov %s726_s24  ;;  %s883_s15 = smov %s646_s16 }
 0x136   : > { %s884_s16 = smov %s886_s19  ;;  %19 = sbr.rel (!%p17_p11) target bundleno = 6 (0x6), region = 101 }
 0x13d   :  { %350 = vsyncpa [#allocation5], 1 }
 0x13e   :  { %352 = vsyncpa [#allocation5 + $0x1], 1 }
 0x13f   :  { %353 = vsyncpa [#allocation7], 1 }
 0x140   :  { %355 = vsyncpa [#allocation7 + $0x1], 1 }

</bundles_post_ra>
